<compile_context>
chip_gen: v7x
topology: tpu7x:2x2x1
jax: 0.10.0
libtpu: 0.0.40
codegen_flags: <defaults>
</compile_context>

<pallas_src>
import jax
import jax.numpy as jnp
from jax import lax
from jax.experimental import pallas as pl
from jax.experimental.pallas import tpu as pltpu


def _round_up(x: int, m: int) -> int:
    return ((x + m - 1) // m) * m


def _pick_token_tile(n_tokens: int, itemsize: int) -> int:
    """Rows gathered per grid step.

    Aligned to the dtype sublane-packing height, capped at 256, and sized so
    the grid keeps >= 2 steps when the batch allows (v7x megacore sharding).
    """
    pack = {4: 8, 2: 16, 1: 32}.get(itemsize, 8)
    target = _round_up(max(1, -(-n_tokens // 2)), pack)   # ~2 grid steps
    return max(pack, min(256, target))


def _gather_rows_dma_kernel(ids_ref, nvalid_ref, table_hbm, out_ref, sems):
    """One grid step gathers `token_tile` embedding rows straight into out_ref.

    ids_ref:    (B_pad,) int32 SMEM (scalar prefetch) -- padded last-token ids
    nvalid_ref: (1,)     int32 SMEM (scalar prefetch) -- number of real tokens
    table_hbm:  (V, H)   dtype HBM ref (memory_space=pl.ANY; no auto-DMA)
    out_ref:    (TT, H)  dtype VMEM output block (DMA destination -- no staging)
    sems:       (TT,)    DMA semaphores, one per in-flight row copy
    """
    tt = out_ref.shape[0]
    base = pl.program_id(0) * tt
    n_valid = nvalid_ref[0]

    if tt <= 32:
        # Small tile: fully static unroll. Descriptors are stashed so the wait
        # uses exactly the descriptor that was started (no `.at[0]` rebuild).
        copies = []
        for j in range(tt):
            row = ids_ref[base + j]
            cp = pltpu.make_async_copy(table_hbm.at[row], out_ref.at[j], sems.at[j])
            copies.append(cp)

            @pl.when(base + j < n_valid)        # skip DMAs for padded tail slots
            def _(cp=cp):
                cp.start()

        for j, cp in enumerate(copies):
            @pl.when(base + j < n_valid)
            def _(cp=cp):
                cp.wait()
    else:
        # Large tile: moderate unroll keeps LLO visibility without the bundle /
        # scalar-register bloat of a 128-256-way static unroll. All starts are
        # issued before the first wait so the whole tile's DMAs overlap.
        def _issue(j, carry):
            row = ids_ref[base + j]

            @pl.when(base + j < n_valid)
            def _():
                pltpu.make_async_copy(table_hbm.at[row], out_ref.at[j],
                                      sems.at[j]).start()
            return carry

        def _drain(j, carry):
            row = ids_ref[base + j]

            @pl.when(base + j < n_valid)
            def _():
                pltpu.make_async_copy(table_hbm.at[row], out_ref.at[j],
                                      sems.at[j]).wait()
            return carry

        lax.fori_loop(0, tt, _issue, 0, unroll=8)
        lax.fori_loop(0, tt, _drain, 0, unroll=8)

    # TODO(synk): optional dedup of repeated last-token ids ([SEP]/[PAD]) within
    # a tile would cut HBM reads to ~num_unique; skipped to keep the body DMA-only.


def _gather_rows_vmem_kernel(ids_ref, nvalid_ref, table_ref, out_ref):
    """Small-table fast path: table resident in VMEM, rows gathered with
    dynamic sublane slices (no per-row HBM DMA latency). Only selected when
    the whole table fits comfortably in scoped VMEM."""
    del nvalid_ref  # padded slots gather row 0 (clamped, valid) and are sliced off
    tt = out_ref.shape[0]
    base = pl.program_id(0) * tt
    for j in range(tt):
        row = ids_ref[base + j]
        out_ref[pl.ds(j, 1), :] = table_ref[pl.ds(row, 1), :]


def last_token_embedding_pallas(last_ids: jax.Array,
                                table: jax.Array,
                                *,
                                token_tile: int | None = None,
                                force_dma_gather: bool = False,
                                vmem_table_bytes_max: int = 4 * 1024 * 1024
                                ) -> jax.Array:
    """Gather table[last_ids] -> [B, H]."""
    (B,) = last_ids.shape
    V, H = table.shape
    itemsize = jnp.dtype(table.dtype).itemsize

    # Clamp like jnp.take-under-jit does; keeps every DMA source in bounds.
    ids = jnp.clip(last_ids.astype(jnp.int32), 0, V - 1)

    if token_tile is None:
        token_tile = _pick_token_tile(B, itemsize)
    else:
        pack = {4: 8, 2: 16, 1: 32}.get(itemsize, 8)
        token_tile = _round_up(max(token_tile, pack), pack)

    b_pad = _round_up(B, token_tile)
    if b_pad != B:
        ids = jnp.concatenate([ids, jnp.zeros((b_pad - B,), jnp.int32)])
    nvalid = jnp.array([B], jnp.int32)
    grid = (b_pad // token_tile,)

    # Advisory cost: tiny, flop-free DMA op -> XLA won't over-serialize it.
    cost = pl.CostEstimate(flops=0, transcendentals=0,
                           bytes_accessed=2 * b_pad * H * itemsize)

    use_vmem_table = (not force_dma_gather) and (V * H * itemsize <= vmem_table_bytes_max)

    if use_vmem_table:
        out = pl.pallas_call(
            _gather_rows_vmem_kernel,
            out_shape=jax.ShapeDtypeStruct((b_pad, H), table.dtype),
            grid_spec=pltpu.PrefetchScalarGridSpec(
                num_scalar_prefetch=2,                        # ids, nvalid -> SMEM
                grid=grid,
                in_specs=[pl.BlockSpec((V, H), lambda t, ids_r, nv_r: (0, 0))],
                out_specs=pl.BlockSpec((token_tile, H),
                                       lambda t, ids_r, nv_r: (t, 0)),
            ),
            compiler_params=pltpu.CompilerParams(
                dimension_semantics=("parallel",)),
            cost_estimate=cost,
        )(ids, nvalid, table)
    else:
        out = pl.pallas_call(
            _gather_rows_dma_kernel,
            out_shape=jax.ShapeDtypeStruct((b_pad, H), table.dtype),
            grid_spec=pltpu.PrefetchScalarGridSpec(
                num_scalar_prefetch=2,                        # ids, nvalid -> SMEM
                grid=grid,
                in_specs=[pl.BlockSpec(memory_space=pl.ANY)],  # table stays in HBM
                out_specs=pl.BlockSpec((token_tile, H),
                                       lambda t, ids_r, nv_r: (t, 0)),
                scratch_shapes=[pltpu.SemaphoreType.DMA((token_tile,))],
            ),
            compiler_params=pltpu.CompilerParams(
                dimension_semantics=("parallel",)),            # megacore on v7x
            cost_estimate=cost,
        )(ids, nvalid, table)

    return out[:B]


class ModernBertForMaskedLMForEmbeddingJAX:
    """JAX/Pallas port of the forward() path of the PyTorch module."""

    def __init__(self, vocab_size: int, hidden_size: int, key: jax.Array,
                 dtype=jnp.float32):
        k_emb, k_bias = jax.random.split(key)
        # embeddings.weight : [vocab_size, hidden_size]
        self.embeddings_weight = (
            jax.random.normal(k_emb, (vocab_size, hidden_size), jnp.float32) * 0.02
        ).astype(dtype)
        # decoder is weight-tied to embeddings; it is never called in forward().
        self.decoder_weight = self.embeddings_weight
        self.decoder_bias = (
            jax.random.normal(k_bias, (vocab_size,), jnp.float32) * 0.02
        ).astype(dtype)
        # TODO(synk): decoder Linear (tied lm-head) is unused in the reference
        # forward(); kept only for parameter parity, not lowered to Pallas.

    def forward(self, input_ids: jax.Array,
                inputs_embeds: jax.Array | None = None) -> jax.Array:
        if inputs_embeds is not None:
            # embeddings = inputs_embeds; return embeddings[:, -1, :]
            return inputs_embeds[:, -1, :]
        # Only the last token's embedding is ever used: slice first, gather
        # exactly B rows inside the kernel.
        last_ids = input_ids[:, -1]
        return last_token_embedding_pallas(last_ids, self.embeddings_weight)


if __name__ == "__main__":
    B, S = 2, 8          # batch, sequence length
    V, H = 256, 128      # vocab size, hidden size

    key = jax.random.PRNGKey(0)
    k_model, k_ids = jax.random.split(key)

    model = ModernBertForMaskedLMForEmbeddingJAX(V, H, k_model)
    input_ids = jax.random.randint(k_ids, (B, S), minval=0, maxval=V, dtype=jnp.int32)

    # Reference: plain JAX gather + last-token slice.
    ref = jnp.take(model.embeddings_weight, input_ids, axis=0)[:, -1, :]

    # Default path: tiny table -> VMEM-resident fast path.
    out = jax.block_until_ready(model.forward(input_ids))
    assert out.shape == (B, H), out.shape
    assert jnp.allclose(out, ref, atol=1e-6, rtol=1e-6), "vmem-path mismatch vs reference"

    # Production path (vocab table too big for VMEM): HBM table + per-row DMA
    # gather straight into the pipelined output block.
    out_dma = jax.block_until_ready(
        last_token_embedding_pallas(input_ids[:, -1], model.embeddings_weight,
                                    force_dma_gather=True))
    assert out_dma.shape == (B, H), out_dma.shape
    assert jnp.allclose(out_dma, ref, atol=1e-6, rtol=1e-6), "dma-path mismatch vs reference"

    print("KERNEL_OK")
</pallas_src>

<mosaic_0001>
module attributes {stable_mosaic.version = 11 : i64} {
  func.func @_gather_rows_vmem_kernel(%arg0: i32, %arg1: memref<8xi32, #tpu.memory_space<smem>>, %arg2: memref<1xi32, #tpu.memory_space<smem>>, %arg3: memref<256x128xf32, #tpu.memory_space<vmem>>, %arg4: memref<8x128xf32, #tpu.memory_space<vmem>>) attributes {dimension_semantics = [#tpu.dimension_semantics<parallel>], iteration_bounds = array<i64: 1>, scalar_prefetch = 2 : i64, scratch_operands = 0 : i64, tpu.core_type = #tpu.core_type<tc>, window_params = [{pipeline_mode = #tpu.pipeline_mode<synchronous>, transform_indices = @transform_0, window_bounds = array<i64: 256, 128>}, {transform_indices = @transform_1, window_bounds = array<i64: 8, 128>}]} {
    %c8_i32 = arith.constant 8 : i32
    %0 = arith.muli %arg0, %c8_i32 : i32
    %c0_i32 = arith.constant 0 : i32
    %1 = arith.addi %0, %c0_i32 : i32
    %2 = arith.index_cast %1 : i32 to index
    %3 = memref.load %arg1[%2] : memref<8xi32, #tpu.memory_space<smem>>
    %4 = arith.index_cast %3 : i32 to index
    %c0 = arith.constant 0 : index
    %5 = vector.load %arg3[%4, %c0] : memref<256x128xf32, #tpu.memory_space<vmem>>, vector<1x128xf32>
    %c0_0 = arith.constant 0 : index
    %c0_1 = arith.constant 0 : index
    %6 = vector.load %arg4[%c0_0, %c0_1] : memref<8x128xf32, #tpu.memory_space<vmem>>, vector<1x128xf32>
    tpu.vector_store %arg4[%c0_0, %c0_1], %5 {strides = array<i32>} : memref<8x128xf32, #tpu.memory_space<vmem>>, vector<1x128xf32>,
    %c1_i32 = arith.constant 1 : i32
    %7 = arith.addi %0, %c1_i32 : i32
    %8 = arith.index_cast %7 : i32 to index
    %9 = memref.load %arg1[%8] : memref<8xi32, #tpu.memory_space<smem>>
    %10 = arith.index_cast %9 : i32 to index
    %c0_2 = arith.constant 0 : index
    %11 = vector.load %arg3[%10, %c0_2] : memref<256x128xf32, #tpu.memory_space<vmem>>, vector<1x128xf32>
    %c1 = arith.constant 1 : index
    %c0_3 = arith.constant 0 : index
    %12 = vector.load %arg4[%c1, %c0_3] : memref<8x128xf32, #tpu.memory_space<vmem>>, vector<1x128xf32>
    tpu.vector_store %arg4[%c1, %c0_3], %11 {strides = array<i32>} : memref<8x128xf32, #tpu.memory_space<vmem>>, vector<1x128xf32>,
    %c2_i32 = arith.constant 2 : i32
    %13 = arith.addi %0, %c2_i32 : i32
    %14 = arith.index_cast %13 : i32 to index
    %15 = memref.load %arg1[%14] : memref<8xi32, #tpu.memory_space<smem>>
    %16 = arith.index_cast %15 : i32 to index
    %c0_4 = arith.constant 0 : index
    %17 = vector.load %arg3[%16, %c0_4] : memref<256x128xf32, #tpu.memory_space<vmem>>, vector<1x128xf32>
    %c2 = arith.constant 2 : index
    %c0_5 = arith.constant 0 : index
    %18 = vector.load %arg4[%c2, %c0_5] : memref<8x128xf32, #tpu.memory_space<vmem>>, vector<1x128xf32>
    tpu.vector_store %arg4[%c2, %c0_5], %17 {strides = array<i32>} : memref<8x128xf32, #tpu.memory_space<vmem>>, vector<1x128xf32>,
    %c3_i32 = arith.constant 3 : i32
    %19 = arith.addi %0, %c3_i32 : i32
    %20 = arith.index_cast %19 : i32 to index
    %21 = memref.load %arg1[%20] : memref<8xi32, #tpu.memory_space<smem>>
    %22 = arith.index_cast %21 : i32 to index
    %c0_6 = arith.constant 0 : index
    %23 = vector.load %arg3[%22, %c0_6] : memref<256x128xf32, #tpu.memory_space<vmem>>, vector<1x128xf32>
    %c3 = arith.constant 3 : index
    %c0_7 = arith.constant 0 : index
    %24 = vector.load %arg4[%c3, %c0_7] : memref<8x128xf32, #tpu.memory_space<vmem>>, vector<1x128xf32>
    tpu.vector_store %arg4[%c3, %c0_7], %23 {strides = array<i32>} : memref<8x128xf32, #tpu.memory_space<vmem>>, vector<1x128xf32>,
    %c4_i32 = arith.constant 4 : i32
    %25 = arith.addi %0, %c4_i32 : i32
    %26 = arith.index_cast %25 : i32 to index
    %27 = memref.load %arg1[%26] : memref<8xi32, #tpu.memory_space<smem>>
    %28 = arith.index_cast %27 : i32 to index
    %c0_8 = arith.constant 0 : index
    %29 = vector.load %arg3[%28, %c0_8] : memref<256x128xf32, #tpu.memory_space<vmem>>, vector<1x128xf32>
    %c4 = arith.constant 4 : index
    %c0_9 = arith.constant 0 : index
    %30 = vector.load %arg4[%c4, %c0_9] : memref<8x128xf32, #tpu.memory_space<vmem>>, vector<1x128xf32>
    tpu.vector_store %arg4[%c4, %c0_9], %29 {strides = array<i32>} : memref<8x128xf32, #tpu.memory_space<vmem>>, vector<1x128xf32>,
    %c5_i32 = arith.constant 5 : i32
    %31 = arith.addi %0, %c5_i32 : i32
    %32 = arith.index_cast %31 : i32 to index
    %33 = memref.load %arg1[%32] : memref<8xi32, #tpu.memory_space<smem>>
    %34 = arith.index_cast %33 : i32 to index
    %c0_10 = arith.constant 0 : index
    %35 = vector.load %arg3[%34, %c0_10] : memref<256x128xf32, #tpu.memory_space<vmem>>, vector<1x128xf32>
    %c5 = arith.constant 5 : index
    %c0_11 = arith.constant 0 : index
    %36 = vector.load %arg4[%c5, %c0_11] : memref<8x128xf32, #tpu.memory_space<vmem>>, vector<1x128xf32>
    tpu.vector_store %arg4[%c5, %c0_11], %35 {strides = array<i32>} : memref<8x128xf32, #tpu.memory_space<vmem>>, vector<1x128xf32>,
    %c6_i32 = arith.constant 6 : i32
    %37 = arith.addi %0, %c6_i32 : i32
    %38 = arith.index_cast %37 : i32 to index
    %39 = memref.load %arg1[%38] : memref<8xi32, #tpu.memory_space<smem>>
    %40 = arith.index_cast %39 : i32 to index
    %c0_12 = arith.constant 0 : index
    %41 = vector.load %arg3[%40, %c0_12] : memref<256x128xf32, #tpu.memory_space<vmem>>, vector<1x128xf32>
    %c6 = arith.constant 6 : index
    %c0_13 = arith.constant 0 : index
    %42 = vector.load %arg4[%c6, %c0_13] : memref<8x128xf32, #tpu.memory_space<vmem>>, vector<1x128xf32>
    tpu.vector_store %arg4[%c6, %c0_13], %41 {strides = array<i32>} : memref<8x128xf32, #tpu.memory_space<vmem>>, vector<1x128xf32>,
    %c7_i32 = arith.constant 7 : i32
    %43 = arith.addi %0, %c7_i32 : i32
    %44 = arith.index_cast %43 : i32 to index
    %45 = memref.load %arg1[%44] : memref<8xi32, #tpu.memory_space<smem>>
    %46 = arith.index_cast %45 : i32 to index
    %c0_14 = arith.constant 0 : index
    %47 = vector.load %arg3[%46, %c0_14] : memref<256x128xf32, #tpu.memory_space<vmem>>, vector<1x128xf32>
    %c7 = arith.constant 7 : index
    %c0_15 = arith.constant 0 : index
    %48 = vector.load %arg4[%c7, %c0_15] : memref<8x128xf32, #tpu.memory_space<vmem>>, vector<1x128xf32>
    tpu.vector_store %arg4[%c7, %c0_15], %47 {strides = array<i32>} : memref<8x128xf32, #tpu.memory_space<vmem>>, vector<1x128xf32>,
    return
  }
  func.func @transform_0(%arg0: i32, %arg1: memref<8xi32, #tpu.memory_space<smem>>, %arg2: memref<1xi32, #tpu.memory_space<smem>>) -> (i32, i32) {
    %c0_i32 = arith.constant 0 : i32
    %c0_i32_0 = arith.constant 0 : i32
    %c0_i32_1 = arith.constant 0 : i32
    return %c0_i32, %c0_i32_0 : i32, i32
  }
  func.func @transform_1(%arg0: i32, %arg1: memref<8xi32, #tpu.memory_space<smem>>, %arg2: memref<1xi32, #tpu.memory_space<smem>>) -> (i32, i32) {
    %c0_i32 = arith.constant 0 : i32
    %c0_i32_0 = arith.constant 0 : i32
    return %arg0, %c0_i32 : i32, i32
  }
}

</mosaic_0001>

<bundles_post_ra>
// kernel: tpu_custom_call.1
= control target key start
LH: loop header
LB: loop body
LE: loop exit
PB: predicated region body
PF: predicated region fallthrough
CT: control target
= control target key end

     0   :  { %s228_s0 = inlined_call_operand.vmem [shape: s32[8], index: 0, kind: input, shape index: {}]   ;;  %s229_s1 = inlined_call_operand.<no memory space> [shape: s32[1], index: 1, kind: input, shape index: {}]   ;;  %s230_s2 = inlined_call_operand.hbm [shape: f32[256,128], index: 2, kind: input, shape index: {}]   ;;  %s231_s3 = inlined_call_operand.hbm [shape: f32[8,128], index: 3, kind: output, shape index: {}]  }
   0x1   :  { %s8_s14 = sshll.u32 %s228_s0, 4  ;;  %s9_s14 = int_to_ptr.vmem [resolvable:$true] %s8_s14 }
   0x2   :  { %s107_s15 = scalar_lea.vmem %s9_s14, 16  ;;  %p112_p1 = scmp.lt.s32.totalorder %s9_s14, %s9_s14 }
   0x3   :  { %p108_p0 = scmp.ne.s32.totalorder %s9_s14, %s107_s15  ;;  %p113_p2 = scmp.lt.s32.totalorder %s107_s15, %s107_s15 }
   0x5   :  { %p114_p3 = por %p113_p2, %p112_p1 }
   0x7   :  { %p115_p4 = pnand %p114_p3, %p108_p0 }
   0x9   :  { %118 = shalt.err (!%p115_p4)  }
   0xa   :  { %s169_s16 = smov [#allocation3]  }
   0xb   :  { %11 = dma.vmem_to_smem %s9_s14, 16, %s169_s16, [#allocation2] }
   0xc   :  { %163 = dma.done.wait [#allocation2], 16 }
   0xd   :  { %164 = vsyncadd [#allocation2], 4294967280 }
   0xe   :  { %14 = sfence }
   0xf   :  { %15 = vsyncpa [#allocation6], 0 }
  0x10   :  { %16 = vsyncpa [#allocation7], 0  ;;  %s170_s1 = smov [#allocation5]   ;;  %s119_s19 = scalar_lea.hbm %s230_s2, 4096 }
  0x11   :  { %s22_s17 = sshll.u32 %s170_s1, 4  ;;  %p120_p5 = scmp.ne.s32.totalorder %s230_s2, %s119_s19  ;;  %s23_s17 = int_to_ptr.vmem [resolvable:$true] %s22_s17 }
  0x12   :  { %p123_p6 = scmp.lt.u32.totalorder %s119_s19, %s230_s2 }
  0x14   :  { %p125_p7 = pnand %p123_p6, %p120_p5 }
  0x16   :  { %128 = shalt.err (!%p125_p7)
}
  0x17   :  { %s129_s24 = scalar_lea.vmem %s23_s17, 4096  ;;  %p134_p9 = scmp.lt.s32.totalorder %s23_s17, %s23_s17 }
  0x18   :  { %p130_p8 = scmp.ne.s32.totalorder %s23_s17, %s129_s24  ;;  %p135_p10 = scmp.lt.s32.totalorder %s129_s24, %s129_s24 }
  0x1a   :  { %p136_p11 = por %p135_p10, %p134_p9 }
  0x1c   :  { %p137_p12 = pnand %p136_p11, %p130_p8 }
  0x1e   :  { %140 = shalt.err (!%p137_p12)
}
  0x1f   :  { %s171_s25 = smov 128   ;;  %s172_s26 = smov 8  }
  0x20   :  { %28 = dma.hbm_to_vmem [thread:$0]  %s230_s2, 4096, %s23_s17, [#allocation6], %s171_s25, %s171_s25, %s172_s26  }
  0x21   :  { %165 = dma.done.wait [#allocation6], 4096  }
  0x22   :  { %166 = vsyncadd [#allocation6], 4294963200  ;;  %s33_s29 = sld [smem:[#allocation3]]  ;;  %s95_s30 = sld [smem:[#allocation3 + $0x1]] }
  0x23   :  { %s96_s4 = sld [smem:[#allocation3 + $0x2]]  ;;  %s97_s5 = sld [smem:[#allocation3 + $0x3]] }
  0x24   :  { %s98_s6 = sld [smem:[#allocation3 + $0x4]]  ;;  %s99_s7 = sld [smem:[#allocation3 + $0x5]] }
  0x25   :  { %s100_s8 = sld [smem:[#allocation3 + $0x6]]  ;;  %s101_s9 = sld [smem:[#allocation3 + $0x7]] }
  0x26   :  { %s173_s10 = smov [#allocation8]  }
  0x27   :  { %s78_s11 = sshll.u32 %s173_s10, 4  ;;  %s209_s11 = int_to_ptr.vmem [resolvable:$true] %s78_s11 }
  0x28   :  { %s34_s12 = scalar_lea.vmem [#allocation5], %s33_s29  ;;  %s39_s13 = scalar_lea.vmem [#allocation5], %s95_s30 }
  0x29   :  { %v35_v0 = vld [vmem:[%s34_s12] sm:$0x1]  ;;  %s44_s2 = scalar_lea.vmem [#allocation5], %s96_s4  ;;  %s49_s14 = scalar_lea.vmem [#allocation5], %s97_s5 }
  0x2a   :  { %v40_v1 = vld [vmem:[%s39_s13] sm:$0x1]  ;;  %36 = vst [vmem:[#allocation8] sm:$0x1] %v35_v0  ;;  %s54_s15 = scalar_lea.vmem [#allocation5], %s98_s6  ;;  %s59_s16 = scalar_lea.vmem [#allocation5], %s99_s7 }
  0x2b   :  { %41 = vst [vmem:[#allocation8 + $0x1] sm:$0x1] %v40_v1  ;;  %v45_v2 = vld [vmem:[%s44_s2] sm:$0x1]  ;;  %s64_s1 = scalar_lea.vmem [#allocation5], %s100_s8  ;;  %s69_s17 = scalar_lea.vmem [#allocation5], %s101_s9 }
  0x2c   :  { %v50_v3 = vld [vmem:[%s49_s14] sm:$0x1]  ;;  %46 = vst [vmem:[#allocation8 + $0x2] sm:$0x1] %v45_v2  ;;  %s141_s18 = scalar_lea.vmem %s209_s11, 128  ;;  %p146_p0 = scmp.lt.s32.totalorder %s209_s11, %s209_s11 }
  0x2d   :  { %51 = vst [vmem:[#allocation8 + $0x3] sm:$0x1] %v50_v3  ;;  %v55_v4 = vld [vmem:[%s54_s15] sm:$0x1]  ;;  %p142_p13 = scmp.ne.s32.totalorder %s209_s11, %s141_s18  ;;  %p147_p1 = scmp.lt.s32.totalorder %s141_s18, %s141_s18 }
  0x2e   :  { %v60_v5 = vld [vmem:[%s59_s16] sm:$0x1]  ;;  %56 = vst [vmem:[#allocation8 + $0x4] sm:$0x1] %v55_v4 }
  0x2f   :  { %61 = vst [vmem:[#allocation8 + $0x5] sm:$0x1] %v60_v5  ;;  %v65_v6 = vld [vmem:[%s64_s1] sm:$0x1]  ;;  %p148_p2 = por %p147_p1, %p146_p0 }
  0x30   :  { %v70_v7 = vld [vmem:[%s69_s17] sm:$0x1]  ;;  %66 = vst [vmem:[#allocation8 + $0x6] sm:$0x1] %v65_v6 }
  0x31   :  { %71 = vst [vmem:[#allocation8 + $0x7] sm:$0x1] %v70_v7  ;;  %p149_p3 = pnand %p148_p2, %p142_p13 }
  0x33   :  { %152 = shalt.err (!%p149_p3)
}
  0x34   :  { %s153_s20 = scalar_lea.hbm %s231_s3, 128 }
  0x35   :  { %p154_p4 = scmp.ne.s32.totalorder %s231_s3, %s153_s20  ;;  %p157_p5 = scmp.lt.u32.totalorder %s153_s20, %s231_s3 }
  0x37   :  { %p159_p6 = pnand %p157_p5, %p154_p4 }
  0x39   :  { %162 = shalt.err (!%p159_p6)
}
  0x3a   :  { %81 = dma.vmem_to_hbm [thread:$0]  %s209_s11, 128, %s231_s3, [#allocation7]  }
  0x3b   :  { %167 = dma.done.wait [#allocation7], 128  }
  0x3c   :  { %168 = vsyncadd [#allocation7], 4294967168 }
  0x3d   :  { %85 = vsyncpa [#allocation6], 1 }
  0x3e   :  { %86 = vsyncpa [#allocation7], 1 }

</bundles_post_ra>
